<compile_context>
chip_gen: v5e
topology: v5e:2x2
jax: 0.10.0
libtpu: 0.0.40
codegen_flags: <defaults>
</compile_context>

<pallas_src>
import numpy as np
import jax
import jax.numpy as jnp
from jax.experimental import pallas as pl
from jax.experimental.pallas import tpu as pltpu


# ----------------------------------------------------------------------------
# or_decay_prob (type 3 branch -- the only one forward() uses)
# ----------------------------------------------------------------------------
def or_decay_prob(i, or_type=3, k=12):
    assert or_type == 3  # TODO(synk): or_type 1/2 schedules not implemented
    return float(k / (k + np.exp(i / k)))


# ----------------------------------------------------------------------------
# In-kernel building blocks (pure functions on values)
# ----------------------------------------------------------------------------
def _encode(src_emb, pool_mat, we, be):
    # src_emb (B*S, E) bf16; pool_mat (B, B*S) bf16 block-diag mask/(1/len).
    # bf16 x bf16 -> f32 accumulate: native MXU op (no f32 decomposition).
    pooled = jnp.dot(pool_mat, src_emb, preferred_element_type=jnp.float32)    # (B, E)
    h = jnp.dot(pooled.astype(jnp.bfloat16), we,
                preferred_element_type=jnp.float32)
    return jnp.tanh(h + be)                                                    # (B, H) f32


def _decode(x, w1, b1, w2, b2):
    # x (N, E) f32 -> logits (N, V) f32; bf16 into the MXU, f32 accumulate,
    # elementwise math stays f32 (no bf16 VPU/EUP on v5e).
    h = jnp.tanh(jnp.dot(x.astype(jnp.bfloat16), w1,
                         preferred_element_type=jnp.float32) + b1)
    return jnp.dot(h.astype(jnp.bfloat16), w2,
                   preferred_element_type=jnp.float32) + b2


def _context(sel, enc_out):
    # (N, B) bf16 0/1 selector @ (B, H) -> (N, H) f32 per-row context.
    # TODO(synk): could be a pure layout broadcast (B,1,H)->(B,T,H)->(N,H)
    # instead of a tiny MXU op; 0/1 selector in bf16 is exact either way.
    return jnp.dot(sel, enc_out.astype(jnp.bfloat16),
                   preferred_element_type=jnp.float32)


def _eval_kernel(src_emb_ref, pool_mat_ref, we_ref, be_ref,
                 gold_emb_ref, sel_ref, w1_ref, b1_ref, w2_ref, b2_ref,
                 out_ref):
    enc_out = _encode(src_emb_ref[...], pool_mat_ref[...], we_ref[...], be_ref[...])
    ctx = _context(sel_ref[...], enc_out)
    x = gold_emb_ref[...].astype(jnp.float32) + ctx
    out_ref[...] = _decode(x, w1_ref[...], b1_ref[...], w2_ref[...], b2_ref[...])


def _train_kernel(src_emb_ref, pool_mat_ref, we_ref, be_ref,
                  gold_emb_ref, sel_ref, is_first_ref, keep_gold_ref,
                  bos_emb_ref, dec_embed_ref, w1_ref, b1_ref, w2_ref, b2_ref,
                  out_ref, shift_ref):
    N, E = gold_emb_ref.shape
    V = w2_ref.shape[1]

    # ---- encoder + per-row context -----------------------------------------
    enc_out = _encode(src_emb_ref[...], pool_mat_ref[...], we_ref[...], be_ref[...])
    ctx = _context(sel_ref[...], enc_out)                          # (N, H) f32

    gold_emb = gold_emb_ref[...].astype(jnp.float32)               # (N, E)

    # ---- decoder pass 1 (teacher forcing): only the argmax survives;
    #      the (N, V) pass-1 logits never leave VMEM.
    logits1 = _decode(gold_emb + ctx, w1_ref[...], b1_ref[...],
                      w2_ref[...], b2_ref[...])

    # First-occurrence argmax along V.  Single iota, one cheap i32->f32 cast;
    # f32 index math is exact while V < 2**24 (asserted in the wrapper).
    colf = jax.lax.broadcasted_iota(jnp.int32, (N, V), 1).astype(jnp.float32)
    row_max = jnp.max(logits1, axis=-1, keepdims=True)
    genf = jnp.min(jnp.where(logits1 == row_max, colf, float(V)),
                   axis=-1, keepdims=True)                         # (N, 1)

    # Embedding of the generated tokens: one-hot (bf16) @ table on the MXU.
    # TODO(synk): toy-vocab-only; at realistic V gather via DMA/scalar prefetch
    # instead of keeping the whole (V, E) table resident (v7x VMEM is 64 MiB).
    onehot_gen = (colf == genf).astype(jnp.bfloat16)               # (N, V)
    gen_emb = jnp.dot(onehot_gen, dec_embed_ref[...],
                      preferred_element_type=jnp.float32)          # (N, E) f32

    # ---- shift generated rows down by one (no O(N^2) shift matrix):
    #      aligned stores into a padded VMEM scratch + one sublane-offset load.
    shift_ref[pl.ds(0, 8), :] = jnp.zeros((8, E), jnp.float32)
    shift_ref[pl.ds(8, N), :] = gen_emb
    shifted = shift_ref[pl.ds(7, N), :]                            # row n -> gen_emb[n-1]

    # First position of every sequence takes BOS; this also masks the
    # cross-sequence row that the global shift wraps in.
    is_first = is_first_ref[...] > 0.5                             # (N, 1) bool
    prev_gen_emb = jnp.where(is_first,
                             bos_emb_ref[...].astype(jnp.float32),
                             shifted)                              # (N, E)

    # ---- scheduled-sampling mix (Bernoulli mask sampled in the wrapper) ----
    keep_gold = keep_gold_ref[...] > 0.5                           # (N, 1) bool
    mixed_emb = jnp.where(keep_gold, gold_emb, prev_gen_emb)

    # ---- decoder pass 2 on the mixed tokens -> final lane-dense logits -----
    out_ref[...] = _decode(mixed_emb + ctx, w1_ref[...], b1_ref[...],
                           w2_ref[...], b2_ref[...])


# ----------------------------------------------------------------------------
# pallas_call wrappers (gridless: everything fits comfortably in VMEM)
# ----------------------------------------------------------------------------
_VMEM = pl.BlockSpec(memory_space=pltpu.MemorySpace.VMEM)


def fused_eval_forward(src_emb, pool_mat, we, be, gold_emb, sel, w1, b1, w2, b2):
    N = gold_emb.shape[0]
    V = w2.shape[1]
    return pl.pallas_call(
        _eval_kernel,
        out_shape=jax.ShapeDtypeStruct((N, V), jnp.float32),
        in_specs=[_VMEM] * 10,
        out_specs=_VMEM,
    )(src_emb, pool_mat, we, be, gold_emb, sel, w1, b1, w2, b2)


def fused_train_forward(src_emb, pool_mat, we, be, gold_emb, sel, is_first,
                        keep_gold, bos_emb, dec_embed, w1, b1, w2, b2):
    N, E = gold_emb.shape
    V = w2.shape[1]
    return pl.pallas_call(
        _train_kernel,
        out_shape=jax.ShapeDtypeStruct((N, V), jnp.float32),
        in_specs=[_VMEM] * 14,
        out_specs=_VMEM,
        scratch_shapes=[pltpu.VMEM((N + 8, E), jnp.float32)],   # padded shift buffer
    )(src_emb, pool_mat, we, be, gold_emb, sel, is_first, keep_gold, bos_emb,
      dec_embed, w1, b1, w2, b2)


# ----------------------------------------------------------------------------
# Model (parameters initialized deterministically in-script)
# ----------------------------------------------------------------------------
class PallasEncoderDecoderModel:
    """Concrete encoder/decoder pair with FairseqEncoderDecoderModel.forward
    semantics (teacher forcing + "OR" scheduled sampling)."""

    def __init__(self, vocab, embed_dim, hidden, key):
        # decoder adds the encoder context directly to the token embeddings
        assert hidden == embed_dim, "hidden must equal embed_dim"
        # lane-dense dims -> unmasked MXU tiles and lane-dense logits stores
        assert embed_dim % 128 == 0 and vocab % 128 == 0
        assert vocab < (1 << 24)   # f32-exact index math in the in-kernel argmax
        ks = jax.random.split(key, 5)
        s = 0.02
        self.enc_embed = (s * jax.random.normal(ks[0], (vocab, embed_dim))).astype(jnp.bfloat16)
        self.dec_embed = (s * jax.random.normal(ks[1], (vocab, embed_dim))).astype(jnp.bfloat16)
        self.we = (s * jax.random.normal(ks[2], (embed_dim, hidden))).astype(jnp.bfloat16)
        self.be = jnp.zeros((1, hidden), jnp.float32)
        self.w1 = (s * jax.random.normal(ks[3], (embed_dim, hidden))).astype(jnp.bfloat16)
        self.b1 = jnp.zeros((1, hidden), jnp.float32)
        self.w2 = (s * jax.random.normal(ks[4], (hidden, vocab))).astype(jnp.bfloat16)
        self.b2 = jnp.zeros((1, vocab), jnp.float32)

    # ---- cheap JAX-side glue: gathers + static helper matrices ----
    def _encoder_inputs(self, src_tokens, src_lengths):
        B, S = src_tokens.shape
        src_emb = jnp.take(self.enc_embed, src_tokens.reshape(-1), axis=0)   # (B*S, E) bf16
        mask = (jnp.arange(S)[None, :] < src_lengths[:, None]).astype(jnp.float32)
        inv_len = 1.0 / jnp.maximum(src_lengths.astype(jnp.float32), 1.0)    # clamp 0-len
        w = mask * inv_len[:, None]                                          # (B, S)
        # block-diagonal (B, B*S) pooling matrix in bf16: the 0/1 mask part is
        # exact; the 1/len weights lose ~1e-3 relative precision (fine for a
        # mean pool).
        # TODO(synk): at large B replace with a masked (B,S,E) weighted-sum
        # reduction -- the block-diagonal matmul wastes (B-1)/B of its FLOPs.
        pool_mat = (w[:, None, :] * jnp.eye(B, dtype=jnp.float32)[:, :, None]
                    ).reshape(B, B * S).astype(jnp.bfloat16)
        return src_emb, pool_mat

    @staticmethod
    def _static_glue(B, T):
        N = B * T
        # ctx selector: row n -> encoder_out[n // T]   (0/1, exact in bf16)
        sel = jnp.asarray(np.repeat(np.eye(B, dtype=np.float32), T, axis=0),
                          dtype=jnp.bfloat16)                                # (N, B)
        t_idx = np.arange(N) % T
        is_first = jnp.asarray((t_idx == 0).astype(np.float32)[:, None])     # (N, 1)
        return sel, is_first

    # ---- FairseqEncoderDecoderModel.forward ----
    def forward(self, src_tokens, src_lengths, prev_output_tokens,
                epoch_idx=None, num_updates=None, bos_idx=None,
                is_test=False, sample_key=None):
        # NOTE: is_test must stay a static Python bool (do not trace it).
        B, T = prev_output_tokens.shape
        V = self.w2.shape[1]
        src_emb, pool_mat = self._encoder_inputs(src_tokens, src_lengths)
        gold_emb = jnp.take(self.dec_embed, prev_output_tokens.reshape(-1),
                            axis=0)                                          # (B*T, E) bf16
        sel, is_first = self._static_glue(B, T)

        if is_test:
            logits = fused_eval_forward(src_emb, pool_mat, self.we, self.be,
                                        gold_emb, sel, self.w1, self.b1,
                                        self.w2, self.b2)
        else:
            # P(keep gold token) -- "OR" schedule, type 3.  Mask is drawn
            # host-side (matches torch.bernoulli: independent of the decoder
            # output) and fed to the kernel as a (N,1) 0/1 array.
            prob = or_decay_prob(epoch_idx)
            keep_gold = jax.random.bernoulli(
                sample_key, p=prob, shape=(B * T, 1)).astype(jnp.float32)
            bos_emb = self.dec_embed[bos_idx][None, :]                       # (1, E) bf16
            logits = fused_train_forward(src_emb, pool_mat, self.we, self.be,
                                         gold_emb, sel, is_first, keep_gold,
                                         bos_emb, self.dec_embed, self.w1,
                                         self.b1, self.w2, self.b2)
        return logits.reshape(B, T, V), {"attn": None}


# ----------------------------------------------------------------------------
# Example run
# ----------------------------------------------------------------------------
if __name__ == "__main__":
    B, SRC_LEN, TGT_LEN = 2, 8, 8
    EMBED = 128    # lane-dense; == HIDDEN because enc context adds to embeddings
    HIDDEN = 128
    VOCAB = 256    # multiple of 128 -> lane-dense logits stores

    root = jax.random.PRNGKey(0)
    k_model, k_src, k_prev, k_sample = jax.random.split(root, 4)

    model = PallasEncoderDecoderModel(VOCAB, EMBED, HIDDEN, k_model)

    src_tokens = jax.random.randint(k_src, (B, SRC_LEN), 0, VOCAB, dtype=jnp.int32)
    src_lengths = jnp.array([SRC_LEN, SRC_LEN - 2], dtype=jnp.int32)
    prev_output_tokens = jax.random.randint(
        k_prev, (B, TGT_LEN), 0, VOCAB, dtype=jnp.int32)

    # training path (scheduled sampling inside the fused kernel)
    logits, extra = model.forward(
        src_tokens, src_lengths, prev_output_tokens,
        epoch_idx=1, num_updates=100, bos_idx=0, is_test=False,
        sample_key=k_sample)
    logits = jax.block_until_ready(logits)
    assert logits.shape == (B, TGT_LEN, VOCAB)
    assert logits.dtype == jnp.float32
    assert bool(jnp.all(jnp.isfinite(logits)))

    # inference path (no scheduled sampling)
    test_logits, _ = model.forward(src_tokens, src_lengths, prev_output_tokens,
                                   is_test=True)
    test_logits = jax.block_until_ready(test_logits)
    assert test_logits.shape == (B, TGT_LEN, VOCAB)
    assert bool(jnp.all(jnp.isfinite(test_logits)))

    print("KERNEL_OK")
</pallas_src>

<mosaic_0001>
module attributes {stable_mosaic.version = 11 : i64} {
  func.func @_train_kernel(%arg0: memref<16x128xbf16, #tpu.memory_space<vmem>>, %arg1: memref<2x16xbf16, #tpu.memory_space<vmem>>, %arg2: memref<128x128xbf16, #tpu.memory_space<vmem>>, %arg3: memref<1x128xf32, #tpu.memory_space<vmem>>, %arg4: memref<16x128xbf16, #tpu.memory_space<vmem>>, %arg5: memref<16x2xbf16, #tpu.memory_space<vmem>>, %arg6: memref<16x1xf32, #tpu.memory_space<vmem>>, %arg7: memref<16x1xf32, #tpu.memory_space<vmem>>, %arg8: memref<1x128xbf16, #tpu.memory_space<vmem>>, %arg9: memref<256x128xbf16, #tpu.memory_space<vmem>>, %arg10: memref<128x128xbf16, #tpu.memory_space<vmem>>, %arg11: memref<1x128xf32, #tpu.memory_space<vmem>>, %arg12: memref<128x256xbf16, #tpu.memory_space<vmem>>, %arg13: memref<1x256xf32, #tpu.memory_space<vmem>>, %arg14: memref<16x256xf32, #tpu.memory_space<vmem>>, %arg15: memref<24x128xf32, #tpu.memory_space<vmem>>) attributes {dimension_semantics = [], scalar_prefetch = 0 : i64, scratch_operands = 1 : i64, tpu.core_type = #tpu.core_type<tc>} {
    %c0 = arith.constant 0 : index
    %c0_0 = arith.constant 0 : index
    %0 = vector.load %arg0[%c0, %c0_0] : memref<16x128xbf16, #tpu.memory_space<vmem>>, vector<16x128xbf16>
    %c0_1 = arith.constant 0 : index
    %c0_2 = arith.constant 0 : index
    %1 = vector.load %arg1[%c0_1, %c0_2] : memref<2x16xbf16, #tpu.memory_space<vmem>>, vector<2x16xbf16>
    %c0_3 = arith.constant 0 : index
    %c0_4 = arith.constant 0 : index
    %2 = vector.load %arg2[%c0_3, %c0_4] : memref<128x128xbf16, #tpu.memory_space<vmem>>, vector<128x128xbf16>
    %c0_5 = arith.constant 0 : index
    %c0_6 = arith.constant 0 : index
    %3 = vector.load %arg3[%c0_5, %c0_6] : memref<1x128xf32, #tpu.memory_space<vmem>>, vector<1x128xf32>
    %cst = arith.constant dense<0.000000e+00> : vector<2x128xf32>
    %4 = tpu.matmul %1, %0, %cst {dimension_numbers = #tpu.dot_dimension_numbers<[1], [0], [0], [1], [0, 0, 1, 1], [], []>} : vector<2x16xbf16>, vector<16x128xbf16>, vector<2x128xf32> -> vector<2x128xf32>
    %5 = arith.truncf %4 : vector<2x128xf32> to vector<2x128xbf16>
    %cst_7 = arith.constant dense<0.000000e+00> : vector<2x128xf32>
    %6 = tpu.matmul %5, %2, %cst_7 {dimension_numbers = #tpu.dot_dimension_numbers<[1], [0], [0], [1], [0, 0, 1, 1], [], []>} : vector<2x128xbf16>, vector<128x128xbf16>, vector<2x128xf32> -> vector<2x128xf32>
    %7 = vector.broadcast %3 : vector<1x128xf32> to vector<2x128xf32>
    %8 = arith.addf %6, %7 : vector<2x128xf32>
    %9 = math.tanh %8 : vector<2x128xf32>
    %c0_8 = arith.constant 0 : index
    %c0_9 = arith.constant 0 : index
    %10 = vector.load %arg5[%c0_8, %c0_9] : memref<16x2xbf16, #tpu.memory_space<vmem>>, vector<16x2xbf16>
    %11 = arith.truncf %9 : vector<2x128xf32> to vector<2x128xbf16>
    %cst_10 = arith.constant dense<0.000000e+00> : vector<16x128xf32>
    %12 = tpu.matmul %10, %11, %cst_10 {dimension_numbers = #tpu.dot_dimension_numbers<[1], [0], [0], [1], [0, 0, 1, 1], [], []>} : vector<16x2xbf16>, vector<2x128xbf16>, vector<16x128xf32> -> vector<16x128xf32>
    %c0_11 = arith.constant 0 : index
    %c0_12 = arith.constant 0 : index
    %13 = vector.load %arg4[%c0_11, %c0_12] : memref<16x128xbf16, #tpu.memory_space<vmem>>, vector<16x128xbf16>
    %14 = arith.extf %13 : vector<16x128xbf16> to vector<16x128xf32>
    %15 = arith.addf %14, %12 : vector<16x128xf32>
    %c0_13 = arith.constant 0 : index
    %c0_14 = arith.constant 0 : index
    %16 = vector.load %arg10[%c0_13, %c0_14] : memref<128x128xbf16, #tpu.memory_space<vmem>>, vector<128x128xbf16>
    %c0_15 = arith.constant 0 : index
    %c0_16 = arith.constant 0 : index
    %17 = vector.load %arg11[%c0_15, %c0_16] : memref<1x128xf32, #tpu.memory_space<vmem>>, vector<1x128xf32>
    %c0_17 = arith.constant 0 : index
    %c0_18 = arith.constant 0 : index
    %18 = vector.load %arg12[%c0_17, %c0_18] : memref<128x256xbf16, #tpu.memory_space<vmem>>, vector<128x256xbf16>
    %c0_19 = arith.constant 0 : index
    %c0_20 = arith.constant 0 : index
    %19 = vector.load %arg13[%c0_19, %c0_20] : memref<1x256xf32, #tpu.memory_space<vmem>>, vector<1x256xf32>
    %20 = arith.truncf %15 : vector<16x128xf32> to vector<16x128xbf16>
    %cst_21 = arith.constant dense<0.000000e+00> : vector<16x128xf32>
    %21 = tpu.matmul %20, %16, %cst_21 {dimension_numbers = #tpu.dot_dimension_numbers<[1], [0], [0], [1], [0, 0, 1, 1], [], []>} : vector<16x128xbf16>, vector<128x128xbf16>, vector<16x128xf32> -> vector<16x128xf32>
    %22 = vector.broadcast %17 : vector<1x128xf32> to vector<16x128xf32>
    %23 = arith.addf %21, %22 : vector<16x128xf32>
    %24 = math.tanh %23 : vector<16x128xf32>
    %25 = arith.truncf %24 : vector<16x128xf32> to vector<16x128xbf16>
    %cst_22 = arith.constant dense<0.000000e+00> : vector<16x256xf32>
    %26 = tpu.matmul %25, %18, %cst_22 {dimension_numbers = #tpu.dot_dimension_numbers<[1], [0], [0], [1], [0, 0, 1, 1], [], []>} : vector<16x128xbf16>, vector<128x256xbf16>, vector<16x256xf32> -> vector<16x256xf32>
    %27 = vector.broadcast %19 : vector<1x256xf32> to vector<16x256xf32>
    %28 = arith.addf %26, %27 : vector<16x256xf32>
    %29 = tpu.iota {dimensions = array<i32: 1>} : vector<16x256xi32>
    %30 = arith.sitofp %29 : vector<16x256xi32> to vector<16x256xf32>
    %cst_23 = arith.constant dense<0xFF800000> : vector<16xf32>
    %31 = vector.multi_reduction <maximumf>, %28, %cst_23 [1] : vector<16x256xf32> to vector<16xf32>
    %32 = vector.shape_cast %31 : vector<16xf32> to vector<16x1xf32>
    %33 = vector.broadcast %32 : vector<16x1xf32> to vector<16x256xf32>
    %34 = arith.cmpf oeq, %28, %33 : vector<16x256xf32>
    %cst_24 = arith.constant 2.560000e+02 : f32
    %35 = vector.broadcast %cst_24 : f32 to vector<16x256xf32>
    %36 = arith.select %34, %30, %35 : vector<16x256xi1>, vector<16x256xf32>
    %cst_25 = arith.constant dense<0x7F800000> : vector<16xf32>
    %37 = vector.multi_reduction <minimumf>, %36, %cst_25 [1] : vector<16x256xf32> to vector<16xf32>
    %38 = vector.shape_cast %37 : vector<16xf32> to vector<16x1xf32>
    %39 = vector.broadcast %38 : vector<16x1xf32> to vector<16x256xf32>
    %40 = arith.cmpf oeq, %30, %39 : vector<16x256xf32>
    %41 = arith.extui %40 : vector<16x256xi1> to vector<16x256xi32>
    %42 = arith.sitofp %41 : vector<16x256xi32> to vector<16x256xf32>
    %43 = arith.truncf %42 : vector<16x256xf32> to vector<16x256xbf16>
    %c0_26 = arith.constant 0 : index
    %c0_27 = arith.constant 0 : index
    %44 = vector.load %arg9[%c0_26, %c0_27] : memref<256x128xbf16, #tpu.memory_space<vmem>>, vector<256x128xbf16>
    %cst_28 = arith.constant dense<0.000000e+00> : vector<16x128xf32>
    %45 = tpu.matmul %43, %44, %cst_28 {dimension_numbers = #tpu.dot_dimension_numbers<[1], [0], [0], [1], [0, 0, 1, 1], [], []>} : vector<16x256xbf16>, vector<256x128xbf16>, vector<16x128xf32> -> vector<16x128xf32>
    %cst_29 = arith.constant 0.000000e+00 : f32
    %46 = vector.broadcast %cst_29 : f32 to vector<8x128xf32>
    %c0_30 = arith.constant 0 : index
    %c0_31 = arith.constant 0 : index
    %47 = vector.load %arg15[%c0_30, %c0_31] : memref<24x128xf32, #tpu.memory_space<vmem>>, vector<8x128xf32>
    tpu.vector_store %arg15[%c0_30, %c0_31], %46 {strides = array<i32>} : memref<24x128xf32, #tpu.memory_space<vmem>>, vector<8x128xf32>,
    %c8 = arith.constant 8 : index
    %c0_32 = arith.constant 0 : index
    %48 = vector.load %arg15[%c8, %c0_32] : memref<24x128xf32, #tpu.memory_space<vmem>>, vector<16x128xf32>
    tpu.vector_store %arg15[%c8, %c0_32], %45 {strides = array<i32>} : memref<24x128xf32, #tpu.memory_space<vmem>>, vector<16x128xf32>,
    %c7 = arith.constant 7 : index
    %c0_33 = arith.constant 0 : index
    %49 = vector.load %arg15[%c7, %c0_33] : memref<24x128xf32, #tpu.memory_space<vmem>>, vector<16x128xf32>
    %c0_34 = arith.constant 0 : index
    %c0_35 = arith.constant 0 : index
    %50 = vector.load %arg6[%c0_34, %c0_35] : memref<16x1xf32, #tpu.memory_space<vmem>>, vector<16x1xf32>
    %cst_36 = arith.constant 5.000000e-01 : f32
    %51 = vector.broadcast %cst_36 : f32 to vector<16x1xf32>
    %52 = arith.cmpf ogt, %50, %51 : vector<16x1xf32>
    %c0_37 = arith.constant 0 : index
    %c0_38 = arith.constant 0 : index
    %53 = vector.load %arg8[%c0_37, %c0_38] : memref<1x128xbf16, #tpu.memory_space<vmem>>, vector<1x128xbf16>
    %54 = arith.extf %53 : vector<1x128xbf16> to vector<1x128xf32>
    %55 = vector.shape_cast %52 : vector<16x1xi1> to vector<16x1xi1>
    %56 = vector.broadcast %55 : vector<16x1xi1> to vector<16x128xi1>
    %57 = vector.shape_cast %54 : vector<1x128xf32> to vector<1x128xf32>
    %58 = vector.broadcast %57 : vector<1x128xf32> to vector<16x128xf32>
    %59 = arith.select %56, %58, %49 : vector<16x128xi1>, vector<16x128xf32>
    %c0_39 = arith.constant 0 : index
    %c0_40 = arith.constant 0 : index
    %60 = vector.load %arg7[%c0_39, %c0_40] : memref<16x1xf32, #tpu.memory_space<vmem>>, vector<16x1xf32>
    %cst_41 = arith.constant 5.000000e-01 : f32
    %61 = vector.broadcast %cst_41 : f32 to vector<16x1xf32>
    %62 = arith.cmpf ogt, %60, %61 : vector<16x1xf32>
    %63 = vector.shape_cast %62 : vector<16x1xi1> to vector<16x1xi1>
    %64 = vector.broadcast %63 : vector<16x1xi1> to vector<16x128xi1>
    %65 = arith.select %64, %14, %59 : vector<16x128xi1>, vector<16x128xf32>
    %66 = arith.addf %65, %12 : vector<16x128xf32>
    %c0_42 = arith.constant 0 : index
    %c0_43 = arith.constant 0 : index
    %67 = vector.load %arg10[%c0_42, %c0_43] : memref<128x128xbf16, #tpu.memory_space<vmem>>, vector<128x128xbf16>
    %c0_44 = arith.constant 0 : index
    %c0_45 = arith.constant 0 : index
    %68 = vector.load %arg11[%c0_44, %c0_45] : memref<1x128xf32, #tpu.memory_space<vmem>>, vector<1x128xf32>
    %c0_46 = arith.constant 0 : index
    %c0_47 = arith.constant 0 : index
    %69 = vector.load %arg12[%c0_46, %c0_47] : memref<128x256xbf16, #tpu.memory_space<vmem>>, vector<128x256xbf16>
    %c0_48 = arith.constant 0 : index
    %c0_49 = arith.constant 0 : index
    %70 = vector.load %arg13[%c0_48, %c0_49] : memref<1x256xf32, #tpu.memory_space<vmem>>, vector<1x256xf32>
    %71 = arith.truncf %66 : vector<16x128xf32> to vector<16x128xbf16>
    %cst_50 = arith.constant dense<0.000000e+00> : vector<16x128xf32>
    %72 = tpu.matmul %71, %67, %cst_50 {dimension_numbers = #tpu.dot_dimension_numbers<[1], [0], [0], [1], [0, 0, 1, 1], [], []>} : vector<16x128xbf16>, vector<128x128xbf16>, vector<16x128xf32> -> vector<16x128xf32>
    %73 = vector.broadcast %68 : vector<1x128xf32> to vector<16x128xf32>
    %74 = arith.addf %72, %73 : vector<16x128xf32>
    %75 = math.tanh %74 : vector<16x128xf32>
    %76 = arith.truncf %75 : vector<16x128xf32> to vector<16x128xbf16>
    %cst_51 = arith.constant dense<0.000000e+00> : vector<16x256xf32>
    %77 = tpu.matmul %76, %69, %cst_51 {dimension_numbers = #tpu.dot_dimension_numbers<[1], [0], [0], [1], [0, 0, 1, 1], [], []>} : vector<16x128xbf16>, vector<128x256xbf16>, vector<16x256xf32> -> vector<16x256xf32>
    %78 = vector.broadcast %70 : vector<1x256xf32> to vector<16x256xf32>
    %79 = arith.addf %77, %78 : vector<16x256xf32>
    %c0_52 = arith.constant 0 : index
    %c0_53 = arith.constant 0 : index
    %80 = vector.load %arg14[%c0_52, %c0_53] : memref<16x256xf32, #tpu.memory_space<vmem>>, vector<16x256xf32>
    tpu.vector_store %arg14[%c0_52, %c0_53], %79 {strides = array<i32>} : memref<16x256xf32, #tpu.memory_space<vmem>>, vector<16x256xf32>,
    return
  }
}

</mosaic_0001>

<bundles_post_ra>
// kernel: tpu_custom_call.1
= control target key start
LH: loop header
LB: loop body
LE: loop exit
PB: predicated region body
PF: predicated region fallthrough
CT: control target
= control target key end

     0   :  { %19 = vsyncpa [#allocation4], 0  ;;  %s1659_s0 = inlined_call_operand.vmem [shape: bf16[16,128], index: 0, kind: input, shape index: {}]   ;;  %s1660_s1 = inlined_call_operand.vmem [shape: bf16[2,16], index: 1, kind: input, shape index: {}]   ;;  %s1661_s2 = inlined_call_operand.hbm [shape: bf16[128,128], index: 2, kind: input, shape index: {}]   ;;  %s1662_s3 = inlined_call_operand.vmem [shape: f32[1,128], index: 3, kind: input, shape index: {}]   ;;  %s1663_s4 = inlined_call_operand.vmem [shape: bf16[16,128], index: 4, kind: input, shape index: {}]   ;;  %s1664_s5 = inlined_call_operand.vmem [shape: bf16[16,2], index: 5, kind: input, shape index: {}]   ;;  %s1665_s6 = inlined_call_operand.vmem [shape: f32[16,1], index: 6, kind: input, shape index: {}]   ;;  %s1666_s7 = inlined_call_operand.vmem [shape: f32[16,1], index: 7, kind: input, shape index: {}]   ;;  %s1667_s8 = inlined_call_operand.vmem [shape: bf16[1,128], index: 8, kind: input, shape index: {}]   ;;  %s1668_s9 = inlined_call_operand.hbm [shape: bf16[256,128], index: 9, kind: input, shape index: {}]   ;;  %s1669_s10 = inlined_call_operand.hbm [shape: bf16[128,128], index: 10, kind: input, shape index: {}]   ;;  %s1670_s11 = inlined_call_operand.vmem [shape: f32[1,128], index: 11, kind: input, shape index: {}]   ;;  %s1671_s12 = inlined_call_operand.hbm [shape: bf16[128,256], index: 12, kind: input, shape index: {}]   ;;  %s1672_s13 = inlined_call_operand.vmem [shape: f32[1,256], index: 13, kind: input, shape index: {}]   ;;  %s1673_s14 = inlined_call_operand.hbm [shape: f32[16,256], index: 14, kind: output, shape index: {}]  }
   0x1   :  { %20 = vsyncpa [#allocation7], 0 }
   0x2   :  { %21 = vsyncpa [#allocation10], 0 }
   0x3   :  { %22 = vsyncpa [#allocation5], 0  ;;  %s56_s15 = sshll.u32 %s1668_s9, 4  ;;  %s1493_s16 = smov [#allocation6]   ;;  %s57_s15 = int_to_ptr.hbm [resolvable:$true] %s56_s15 }
   0x4   :  { %s58_s17 = sshll.u32 %s1493_s16, 4  ;;  %s31_s20 = sshll.u32 %s1661_s2, 4  ;;  %s59_s17 = int_to_ptr.vmem [resolvable:$true] %s58_s17  ;;  %s32_s20 = int_to_ptr.hbm [resolvable:$true] %s31_s20 }
   0x5   :  { %s1494_s21 = smov 64   ;;  %s1495_s22 = smov 4  }
   0x6   :  { %64 = dma.hbm_to_vmem [thread:$0]  %s57_s15, 2048, %s59_s17, [#allocation7], %s1494_s21, %s1494_s21, %s1495_s22  }
   0x7   :  { %s1496_s23 = smov [#allocation3]   ;;  %s69_s27 = sshll.u32 %s1669_s10, 4  ;;  %s70_s27 = int_to_ptr.hbm [resolvable:$true] %s69_s27 }
   0x8   :  { %s33_s24 = sshll.u32 %s1496_s23, 4  ;;  %s84_s29 = sshll.u32 %s1671_s12, 4  ;;  %s34_s24 = int_to_ptr.vmem [resolvable:$true] %s33_s24  ;;  %s85_s29 = int_to_ptr.hbm [resolvable:$true] %s84_s29 }
   0x9   :  { %39 = dma.hbm_to_vmem [thread:$0]  %s32_s20, 1024, %s34_s24, [#allocation4], %s1494_s21, %s1494_s21, %s1495_s22  }
   0xa   :  { %s1497_s30 = smov [#allocation8]   ;;  %s1498_s2 = smov [#allocation9]  }
   0xb   :  { %s71_s16 = sshll.u32 %s1497_s30, 4  ;;  %s86_s15 = sshll.u32 %s1498_s2, 4  ;;  %s72_s16 = int_to_ptr.vmem [resolvable:$true] %s71_s16  ;;  %s87_s15 = int_to_ptr.vmem [resolvable:$true] %s86_s15 }
   0xc   :  { %77 = dma.hbm_to_vmem [thread:$0]  %s70_s27, 1024, %s72_s16, [#allocation7], %s1494_s21, %s1494_s21, %s1495_s22  }
   0xd   :  { %s1499_s17 = smov 128   ;;  %s1500_s18 = smov 8  }
   0xe   :  { %92 = dma.hbm_to_vmem [thread:$0]  %s85_s29, 2048, %s87_s15, [#allocation10], %s1499_s17, %s1499_s17, %s1500_s18  }
   0xf   :  { %1485 = dma.done.wait [#allocation4], 1024  }
  0x10   :  { %1486 = vsyncadd [#allocation4], 4294966272 }
  0x11   :  { %1487 = dma.done.wait [#allocation7], 3072  }
  0x12   :  { %1488 = vsyncadd [#allocation7], 4294964224 }
  0x13   :  { %1489 = dma.done.wait [#allocation10], 2048  }
  0x14   :  { %1490 = vsyncadd [#allocation10], 4294965248  ;;  %v1257_v0 = vld [vmem:[%s1659_s0] sm:$0xff]  ;;  %v1265_v1 = vld [vmem:[#allocation3 + $0x38] sm:$0xff]  ;;  %vm138_vm0 = vcmask 130048   ;;  %vm233_vm1 = vcmask 1040384  }
  0x15   :  { %149 = vmatpush.bf16.msra.mxu0 %v1257_v0  ;;  %v114_v2 = vld [vmem:[%s1660_s1] sm:$0x1]  ;;  %207 = vmatpush.bf16.msra.mxu1 %v1265_v1  ;;  %v1264_v3 = vld [vmem:[#allocation3 + $0x30] sm:$0xff]  ;;  %v1262_v5 = vld [vmem:[#allocation3 + $0x20] sm:$0xff]  ;;  %vm229_vm2 = vcmask 15360   ;;  %s936_s20 = sshll.u32 %s1673_s14, 4  ;;  %s937_s20 = int_to_ptr.hbm [resolvable:$true] %s936_s20 }
  0x16   :  { %v1263_v4 = vld [vmem:[#allocation3 + $0x28] sm:$0xff]  ;;  %v1261_v6 = vld [vmem:[#allocation3 + $0x18] sm:$0xff]  ;;  %v1260_v7 = vld [vmem:[#allocation3 + $0x10] sm:$0xff]  ;;  %s1506_s0 = smov 16  }
  0x17   :  { %v1259_v8 = vld [vmem:[#allocation3 + $0x8] sm:$0xff]  ;;  %v1258_v9 = vld [vmem:[#allocation3] sm:$0xff]  ;;  %v1274_v13 = vld [vmem:[#allocation8 + $0x38] sm:$0xff] }
  0x18   :  { %955 = vmatmul.msk.bf16.vlgmr.msra.gmra.mxu0 %vm138_vm0, %v114_v2  ;;  %343 = vmatpush.bf16.msra.mxu3 %v1274_v13  ;;  %v1273_v14 = vld [vmem:[#allocation8 + $0x30] sm:$0xff]  ;;  %v1272_v15 = vld [vmem:[#allocation8 + $0x28] sm:$0xff]  ;;  %v1271_v16 = vld [vmem:[#allocation8 + $0x20] sm:$0xff] }
  0x19   :  { %208 = vmatpush.bf16.msra.mxu1 %v1264_v3  ;;  %v1352_v17 = vld [vmem:[%s1662_s3] ss:$0 sm:$0xff]  ;;  %v1270_v18 = vld [vmem:[#allocation8 + $0x18] sm:$0xff]  ;;  %v1269_v26 = vld [vmem:[#allocation8 + $0x10] sm:$0xff] }
  0x1a   :  { %v1266_v25 = vld [vmem:[%s1664_s5] sm:$0xff]  ;;  %v1267_v28 = vld [vmem:[#allocation8] sm:$0xff]  ;;  %v1083_v29 = vld [vmem:[#allocation9 + $0x70] sm:$0xf] }
  0x1b   :  { %v1268_v27 = vld [vmem:[#allocation8 + $0x8] sm:$0xff]  ;;  %v1290_v30 = vld [vmem:[#allocation9 + $0x74] sm:$0xf0]  ;;  %v1289_v31 = vld [vmem:[#allocation9 + $0x74] sm:$0xf] }
  0x1c   :  { %344 = vmatpush.bf16.msra.mxu3 %v1273_v14  ;;  %v1084_v32 = vor.u32 %v1290_v30, %v1083_v29  ;;  %v1085_v33 = vld [vmem:[#allocation9 + $0x78] sm:$0xf0]  ;;  %v1075_v34 = vld [vmem:[#allocation9 + $0x60] sm:$0xf]  ;;  %v1288_v35 = vld [vmem:[#allocation9 + $0x64] sm:$0xf0] }
  0x1d   :  { %209 = vmatpush.bf16.msra.mxu1 %v1263_v4  ;;  %v1088_v36 = vor.u32 %v1289_v31, %v1085_v33  ;;  %v1287_v37 = vld [vmem:[#allocation9 + $0x64] sm:$0xf]  ;;  %v1077_v38 = vld [vmem:[#allocation9 + $0x68] sm:$0xf0]  ;;  %v1076_v39 = vor.u32 %v1288_v35, %v1075_v34  ;;  %v1067_v41 = vld [vmem:[#allocation9 + $0x50] sm:$0xf] }
  0x1e   :  { %445 = vmatpush.bf16.msrb.mxu0 %v1084_v32  ;;  %v1080_v40 = vor.u32 %v1287_v37, %v1077_v38  ;;  %v1286_v42 = vld [vmem:[#allocation9 + $0x54] sm:$0xf0]  ;;  %v1285_v43 = vld [vmem:[#allocation9 + $0x54] sm:$0xf]  ;;  %v1069_v44 = vld [vmem:[#allocation9 + $0x58] sm:$0xf0] }
  0x1f   :  { %v1068_v45 = vor.u32 %v1286_v42, %v1067_v41  ;;  %v1072_v46 = vor.u32 %v1285_v43, %v1069_v44  ;;  %v1611_v48 = vld [vmem:[%s1663_s4] sm:$0xff]   ;;  %v1059_v55 = vld [vmem:[#allocation9 + $0x40] sm:$0xf]  ;;  %v1283_v57 = vld [vmem:[#allocation9 + $0x44] sm:$0xf] }
  0x20   :  { %345 = vmatpush.bf16.msra.mxu3 %v1272_v15  ;;  %v1333_v49 = vunpack.c.l.bf16 %v1611_v48  ;;  %v1334_v50 = vunpack.c.h.bf16 %v1611_v48  ;;  %v1284_v56 = vld [vmem:[#allocation9 + $0x44] sm:$0xf0]  ;;  %v1061_v59 = vld [vmem:[#allocation9 + $0x48] sm:$0xf0]  ;;  %v1051_v61 = vld [vmem:[#allocation9 + $0x30] sm:$0xf] }
  0x21   :  { %210 = vmatpush.bf16.msra.mxu1 %v1262_v5  ;;  %v1060_v58 = vor.u32 %v1284_v56, %v1059_v55  ;;  %v1064_v60 = vor.u32 %v1283_v57, %v1061_v59  ;;  %v1282_v62 = vld [vmem:[#allocation9 + $0x34] sm:$0xf0]  ;;  %v1281_v63 = vld [vmem:[#allocation9 + $0x34] sm:$0xf]  ;;  %v1053_v1 = vld [vmem:[#allocation9 + $0x38] sm:$0xf0] }
  0x22   :  { %446 = vmatpush.bf16.msrb.mxu0 %v1076_v39  ;;  %v1052_v0 = vor.u32 %v1282_v62, %v1051_v61  ;;  %v1056_v2 = vor.u32 %v1281_v63, %v1053_v1  ;;  %v1043_v3 = vld [vmem:[#allocation9 + $0x20] sm:$0xf]  ;;  %v1280_v4 = vld [vmem:[#allocation9 + $0x24] sm:$0xf0]  ;;  %v1279_v5 = vld [vmem:[#allocation9 + $0x24] sm:$0xf] }
  0x23   :  { %v1037_v13 = vld [vmem:[#allocation9 + $0x18] sm:$0xf0]  ;;  %v1027_v14 = vld [vmem:[#allocation9] sm:$0xf]  ;;  %v1276_v15 = vld [vmem:[#allocation9 + $0x4] sm:$0xf0] }
  0x24   :  { %346 = vmatpush.bf16.msra.mxu3 %v1271_v16  ;;  %v290_v29 = vld [vmem:[%s1672_s13] sm:$0x3]  ;;  %v1298_v42 = vld [vmem:[#allocation6 + $0x38] sm:$0xff]  ;;  %v1297_v44 = vld [vmem:[#allocation6 + $0x30] sm:$0xff] }
  0x25   :  { %211 = vmatpush.bf16.msra.mxu1 %v1261_v6  ;;  %v1044_v6 = vor.u32 %v1280_v4, %v1043_v3  ;;  %v361_v31 = vperm.slane %v290_v29, 0  ;;  %v362_v32 = vperm.slane %v290_v29, 1  ;;  %v1306_v43 = vld [vmem:[#allocation6 + $0x78] sm:$0xff]  ;;  %v1295_v55 = vld [vmem:[#allocation6 + $0x20] sm:$0xff]  ;;  %v1293_v62 = vld [vmem:[#allocation6 + $0x10] sm:$0xff] }
  0x26   :  { %447 = vmatpush.bf16.msrb.mxu0 %v1068_v45  ;;  %v1305_v45 = vld [vmem:[#allocation6 + $0x70] sm:$0xff]  ;;  %v1303_v56 = vld [vmem:[#allocation6 + $0x60] sm:$0xff]  ;;  %v1302_v59 = vld [vmem:[#allocation6 + $0x58] sm:$0xff] }
  0x27   :  { %v1301_v63 = vld [vmem:[#allocation6 + $0x50] sm:$0xff]  ;;  %v1310_v29 = vld [vmem:[#allocation8 + $0x18] sm:$0xff] }
  0x28   :  { %347 = vmatpush.bf16.msra.mxu3 %v1270_v18  ;;  %v1029_v18 = vld [vmem:[#allocation9 + $0x8] sm:$0xf0]  ;;  %v1221_v48 = vld [vmem:[#allocation9 + $0x38] sm:$0xf0] }
  0x29   :  { %212 = vmatpush.bf16.msra.mxu1 %v1260_v7  ;;  %v1045_v7 = vld [vmem:[#allocation9 + $0x28] sm:$0xf0] }
  0x2a   :  { %448 = vmatpush.bf16.msrb.mxu0 %v1060_v58  ;;  %v1294_v58 = vld [vmem:[#allocation6 + $0x18] sm:$0xff] }
  0x2c   :  { %348 = vmatpush.bf16.msra.mxu3 %v1269_v26 }
  0x2d   :  { %213 = vmatpush.bf16.msra.mxu1 %v1259_v8  ;;  %v1048_v8 = vor.u32 %v1279_v5, %v1045_v7 }
  0x2e   :  { %449 = vmatpush.bf16.msrb.mxu0 %v1052_v0 }
  0x30   :  { %349 = vmatpush.bf16.msra.mxu3 %v1268_v27 }
  0x31   :  { %214 = vmatpush.bf16.msra.mxu1 %v1258_v9  ;;  %v1035_v9 = vld [vmem:[#allocation9 + $0x10] sm:$0xf] }
  0x32   :  { %450 = vmatpush.bf16.msrb.mxu0 %v1044_v6 }
  0x34   :  { %350 = vmatpush.bf16.msra.mxu3 %v1267_v28 }
  0x35   :  { %640 = vmatpush.bf16.msrb.mxu1 %v1298_v42  ;;  %v1245_v42 = vld [vmem:[#allocation9 + $0x68] sm:$0xf0] }
  0x38   :  { %654 = vmatpush.bf16.msrb.mxu3 %v1306_v43 }
  0x39   :  { %641 = vmatpush.bf16.msrb.mxu1 %v1297_v44 }
  0x3c   :  { %655 = vmatpush.bf16.msrb.mxu3 %v1305_v45  ;;  %v1235_v45 = vld [vmem:[#allocation9 + $0x50] sm:$0xf] }
  0x95   :  { %v151_v10 = vpop.f32.mrf.mxu0 }
  0x96   :  { %v155_v11 = vpack.c.bf16 %v151_v10, %v151_v10  ;;  %v1278_v10 = vld [vmem:[#allocation9 + $0x14] sm:$0xf0] }
  0x98   :  { %215 = vmatmul.bf16.vlgmr.msra.gmra.mxu1 %v155_v11  ;;  %v1277_v11 = vld [vmem:[#allocation9 + $0x14] sm:$0xf] }
  0x99   :  { %v1040_v16 = vor.u32 %v1277_v11, %v1037_v13  ;;  %v1299_v11 = vld [vmem:[#allocation6 + $0x40] sm:$0xff]  ;;  %v693_v13 = vld [vmem:[%s1666_s7 + $0x8] sm:$0xff] }
  0x9a   :  { %vm695_vm8 = vcmp.gt.f32.partialorder %v693_v13, 0.5 }
  0x9d   :  { %v153_v12 = vpop.f32.mrf.mxu0 }
  0x9e   :  { %v1036_v12 = vor.u32 %v1278_v10, %v1035_v9  ;;  %v1300_v9 = vld [vmem:[#allocation6 + $0x48] sm:$0xff]  ;;  %v1291_v10 = vld [vmem:[#allocation6] sm:$0xff] }
  0xa0   :  { %451 = vmatpush.bf16.msrb.mxu0 %v1036_v12  ;;  %v692_v12 = vld [vmem:[%s1666_s7] sm:$0xff] }
  0xa1   :  { %vm694_vm7 = vcmp.gt.f32.partialorder %v692_v12, 0.5 }
 0x115   :  { %v216_v19 = vpop.f32.mrf.mxu1 }
 0x116   :  { %v217_v20 = vadd.f32 %v1352_v17, %v216_v19  ;;  %v1275_v17 = vld [vmem:[#allocation9 + $0x4] sm:$0xf]  ;;  %v1028_v19 = vor.u32 %v1276_v15, %v1027_v14  ;;  %v673_v14 = vld [vmem:[%s1665_s6] sm:$0xff]  ;;  %v1501_v15 = vmov 0  }
 0x117   :  { %1350 = vset.pattern.permute.xlu0 %v1501_v15  ;;  %1351 = vset.pattern.permute.xlu1 %v1501_v15  ;;  %vm675_vm9 = vcmp.gt.f32.partialorder %v673_v14, 0.5  ;;  %v1227_v14 = vld [vmem:[#allocation9 + $0x40] sm:$0xf] }
 0x118   :  { %1355 = vtanh.f32 %v217_v20  ;;  %v1032_v20 = vor.u32 %v1275_v17, %v1029_v18  ;;  %452 = vmatpush.bf16.msrb.mxu0 %v1028_v19  ;;  %v697_v17 = vsel %vm695_vm8, 1, %v1501_v15  ;;  %1349 = vset.pattern.permute.xlu2 %v1501_v15  ;;  %v679_v18 = vsel %vm675_vm9, 1, %v1501_v15  ;;  %v674_v19 = vld [vmem:[%s1665_s6 + $0x8] sm:$0xff] }
 0x119   :  { %682 = vperm.xlu2 %1349, %v679_v18   ;;  %vm676_vm10 = vcmp.gt.f32.partialorder %v674_v19, 0.5  ;;  %v1229_v18 = vld [vmem:[#allocation9 + $0x48] sm:$0xf0] }
 0x11d   :  { %v218_v21 = vpop.f32.mrf.mxu1 }
 0x11e   :  { %v1356_v22 = vpop.eup %1355 }
 0x11f   :  { %v223_v23 = vpack.c.bf16 %v1356_v22, %v1356_v22  ;;  %v1353_v22 = vld [vmem:[%s1670_s11] ss:$0 sm:$0xff] }
 0x121   :  { %v235_v24 = vsel %vm233_vm1, %v223_v23, 0 }
 0x122   :  { %244 = vmatpush.bf16.msra.mxu2 %v235_v24 }
 0x125   :  { %992 = vmatmul.msk.bf16.vlgmr.msra.gmra.mxu2 %vm229_vm2, %v1266_v25 }
 0x126   :  { %459 = vmatpush.bf16.msrb.mxu2 %v1088_v36 }
 0x12a   :  { %460 = vmatpush.bf16.msrb.mxu2 %v1080_v40 }
 0x12e   :  { %461 = vmatpush.bf16.msrb.mxu2 %v1072_v46  ;;  %v473_v46 = vlaneseq }
 0x132   :  { %462 = vmatpush.bf16.msrb.mxu2 %v1064_v60 }
 0x136   :  { %463 = vmatpush.bf16.msrb.mxu2 %v1056_v2 }
 0x13a   :  { %464 = vmatpush.bf16.msrb.mxu2 %v1048_v8  ;;  %v1292_v8 = vld [vmem:[#allocation6 + $0x8] sm:$0xff] }
 0x13e   :  { %465 = vmatpush.bf16.msrb.mxu2 %v1040_v16  ;;  %v696_v16 = vsel %vm694_vm7, 1, %v1501_v15 }
 0x142   :  { %466 = vmatpush.bf16.msrb.mxu2 %v1032_v20  ;;  %v680_v20 = vsel %vm676_vm10, 1, %v1501_v15  ;;  %v1324_v15 = vld [vmem:[#allocation9 + $0x44] sm:$0xf0] }
 0x143   :  { %685 = vperm.xlu2 %1349, %v680_v20   ;;  %v1219_v20 = vld [vmem:[#allocation9 + $0x30] sm:$0xf] }
 0x1a8   :  { %v1606_v47 = vpop.f32.mrf.mxu2 }
 0x1a9   :  { %v255_v52 = vadd.f32 %v1333_v49, %v1606_v47 }
 0x1b0   :  { %v1615_v51 = vpop.f32.mrf.mxu2 }
 0x1b1   :  { %v256_v53 = vadd.f32 %v1334_v50, %v1615_v51 }
 0x1b3   :  { %v291_v54 = vpack.c.bf16 %v256_v53, %v255_v52  ;;  %v1296_v52 = vld [vmem:[#allocation6 + $0x28] sm:$0xff] }
 0x1b4   :  { %v1304_v53 = vld [vmem:[#allocation6 + $0x68] sm:$0xff]  ;;  %642 = vmatpush.bf16.msrb.mxu1 %v1296_v52 }
 0x1b5   :  { %351 = vmatmul.bf16.vlgmr.msra.gmra.mxu3 %v291_v54  ;;  %v474_v54 = vand.u32 127, %v473_v46  ;;  %v1326_v46 = vld [vmem:[#allocation9 + $0x54] sm:$0xf0] }
 0x1b6   :  { %656 = vmatpush.bf16.msrb.mxu3 %v1304_v53  ;;  %v1325_v53 = vld [vmem:[#allocation9 + $0x54] sm:$0xf] }
 0x1b7   :  { %v475_v57 = vadd.s32 128, %v474_v54  ;;  %v476_v60 = vcvt.s32.f32 %v474_v54  ;;  %v1237_v54 = vld [vmem:[#allocation9 + $0x58] sm:$0xf0] }
 0x1b8   :  { %643 = vmatpush.bf16.msrb.mxu1 %v1295_v55 }
 0x1b9   :  { %v477_v61 = vcvt.s32.f32 %v475_v57 }
 0x1ba   :  { %657 = vmatpush.bf16.msrb.mxu3 %v1303_v56  ;;  %v1236_v56 = vor.u32 %v1326_v46, %v1235_v45 }
 0x1bc   :  { %644 = vmatpush.bf16.msrb.mxu1 %v1294_v58  ;;  %v1240_v58 = vor.u32 %v1325_v53, %v1237_v54 }
 0x1be   :  { %658 = vmatpush.bf16.msrb.mxu3 %v1302_v59  ;;  %v677_v59 = vld [vmem:[%s1667_s8] sm:$0x1] }
 0x1c0   :  { %645 = vmatpush.bf16.msrb.mxu1 %v1293_v62 }
 0x1c2   :  { %659 = vmatpush.bf16.msrb.mxu3 %v1301_v63 }
 0x1c4   :  { %646 = vmatpush.bf16.msrb.mxu1 %v1292_v8 }
 0x1c6   :  { %660 = vmatpush.bf16.msrb.mxu3 %v1300_v9 }
 0x1c8   :  { %647 = vmatpush.bf16.msrb.mxu1 %v1291_v10 }
 0x1ca   :  { %661 = vmatpush.bf16.msrb.mxu3 %v1299_v11 }
 0x238   :  { %v352_v21 = vpop.f32.mrf.mxu3 }
 0x239   :  { %v353_v23 = vadd.f32 %v1353_v22, %v352_v21 }
 0x23b   :  { %1357 = vtanh.f32 %v353_v23  ;;  %v1502_v23 = vmov 1.0|1.0  }
 0x240   :  { %v354_v24 = vpop.f32.mrf.mxu3 }
 0x241   :  { %v355_v25 = vadd.f32 %v1353_v22, %v354_v24  ;;  %v1358_v26 = vpop.eup %1357  ;;  %v1314_v24 = vld [vmem:[#allocation8 + $0x38] sm:$0xff] }
 0x242   :  { %796 = vmatpush.bf16.msra.mxu0 %v1314_v24 }
 0x243   :  { %1359 = vtanh.f32 %v355_v25  ;;  %v1313_v25 = vld [vmem:[#allocation8 + $0x30] sm:$0xff] }
 0x246   :  { %797 = vmatpush.bf16.msra.mxu0 %v1313_v25  ;;  %v1213_v25 = vld [vmem:[#allocation9 + $0x28] sm:$0xf0] }
 0x249   :  { %v1360_v27 = vpop.eup %1359 }
 0x24a   :  { %v359_v28 = vpack.c.bf16 %v1360_v27, %v1358_v26  ;;  %v1312_v26 = vld [vmem:[#allocation8 + $0x28] sm:$0xff]  ;;  %v1503_v27 = vmov 0.0  }
 0x24b   :  { %798 = vmatpush.bf16.msra.mxu0 %v1312_v26  ;;  %668 = vst [vmem:[#allocation2] sm:$0xff] %v1503_v27  ;;  %v1203_v27 = vld [vmem:[#allocation9 + $0x10] sm:$0xf] }
 0x24c   :  { %453 = vmatmul.bf16.vlgmr.msrb.gmra.mxu0 %v359_v28  ;;  %467 = vmatmul.bf16.vlgmr.msrb.gmra.mxu2 %v359_v28  ;;  %v1311_v28 = vld [vmem:[#allocation8 + $0x20] sm:$0xff] }
 0x24f   :  { %799 = vmatpush.bf16.msra.mxu0 %v1311_v28  ;;  %v1318_v28 = vld [vmem:[#allocation9 + $0x14] sm:$0xf0] }
 0x253   :  { %800 = vmatpush.bf16.msra.mxu0 %v1310_v29  ;;  %v1317_v29 = vld [vmem:[#allocation9 + $0x14] sm:$0xf] }
 0x2c9   :  { %v454_v30 = vpop.f32.mrf.mxu0 }
 0x2ca   :  { %v455_v34 = vadd.f32 %v454_v30, %v361_v31  ;;  %v1309_v30 = vld [vmem:[#allocation8 + $0x10] sm:$0xff] }
 0x2cb   :  { %801 = vmatpush.bf16.msra.mxu0 %v1309_v30  ;;  %v1204_v30 = vor.u32 %v1318_v28, %v1203_v27 }
 0x2cf   :  { %v468_v33 = vpop.f32.mrf.mxu2 }
 0x2d0   :  { %v469_v35 = vadd.f32 %v468_v33, %v362_v32  ;;  %v1251_v33 = vld [vmem:[#allocation9 + $0x70] sm:$0xf] }
 0x2d1   :  { %v456_v37 = vpop.f32.mrf.mxu0 }
 0x2d2   :  { %v478_v36 = vmax.f32 %v455_v34, %v469_v35  ;;  %v457_v39 = vadd.f32 %v456_v37, %v361_v31  ;;  %v1308_v31 = vld [vmem:[#allocation8 + $0x8] sm:$0xff]  ;;  %v1253_v37 = vld [vmem:[#allocation9 + $0x78] sm:$0xf0] }
 0x2d3   :  { %802 = vmatpush.bf16.msra.mxu0 %v1308_v31  ;;  %v1205_v31 = vld [vmem:[#allocation9 + $0x18] sm:$0xf0] }
 0x2d4   :  { %479 = vmax.xlane.f32.xlu0 %v478_v36 }
 0x2d7   :  { %v470_v38 = vpop.f32.mrf.mxu2 }
 0x2d8   :  { %v471_v40 = vadd.f32 %v470_v38, %v362_v32  ;;  %v1307_v32 = vld [vmem:[#allocation8] sm:$0xff] }
 0x2d9   :  { %803 = vmatpush.bf16.msra.mxu0 %v1307_v32  ;;  %v1243_v38 = vld [vmem:[#allocation9 + $0x60] sm:$0xf] }
 0x2da   :  { %v481_v41 = vmax.f32 %v457_v39, %v471_v40  ;;  %v1195_v32 = vld [vmem:[#allocation9] sm:$0xf] }
 0x2dc   :  { %482 = vmax.xlane.f32.xlu0 %v481_v41  ;;  %v1327_v41 = vld [vmem:[#allocation9 + $0x64] sm:$0xf] }
 0x2dd   :  { %v1248_v44 = vor.u32 %v1327_v41, %v1245_v42 }
 0x2f0   :  { %699 = vperm.xlu0 %1350, %v696_v16   ;;  %v1323_v16 = vld [vmem:[#allocation9 + $0x44] sm:$0xf] }
 0x2f1   :  { %v1232_v19 = vor.u32 %v1323_v16, %v1229_v18 }
 0x347   :  { %v480_v0 = vpop.xlane.xlu0 %479 }
 0x348   :  { %vm484_vm3 = vcmp.eq.f32.partialorder %v455_v34, %v480_v0  ;;  %vm485_vm4 = vcmp.eq.f32.partialorder %v469_v35, %v480_v0  ;;  %v1330_v34 = vld [vmem:[#allocation9 + $0x74] sm:$0xf0]  ;;  %v1329_v35 = vld [vmem:[#allocation9 + $0x74] sm:$0xf] }
 0x349   :  { %v488_v1 = vsel %vm484_vm3, %v476_v60, 256.0  ;;  %v489_v2 = vsel %vm485_vm4, %v477_v61, 256.0  ;;  %v1252_v36 = vor.u32 %v1330_v34, %v1251_v33  ;;  %v1316_v33 = vld [vmem:[#allocation9 + $0x4] sm:$0xf0]  ;;  %v1208_v34 = vor.u32 %v1317_v29, %v1205_v31 }
 0x34a   :  { %v492_v3 = vmin.f32 %v488_v1, %v489_v2 }
 0x34b   :  { %898 = vmatpush.bf16.msra.mxu2 %v1252_v36  ;;  %v1197_v36 = vld [vmem:[#allocation9 + $0x8] sm:$0xf0] }
 0x34c   :  { %493 = vmin.xlane.f32.xlu1 %v492_v3 }
 0x34f   :  { %v483_v4 = vpop.xlane.xlu0 %482 }
 0x350   :  { %vm486_vm5 = vcmp.eq.f32.partialorder %v457_v39, %v483_v4  ;;  %vm487_vm6 = vcmp.eq.f32.partialorder %v471_v40, %v483_v4  ;;  %v1328_v39 = vld [vmem:[#allocation9 + $0x64] sm:$0xf0]  ;;  %v1256_v40 = vor.u32 %v1329_v35, %v1253_v37  ;;  %v1315_v35 = vld [vmem:[#allocation9 + $0x4] sm:$0xf]  ;;  %v1196_v37 = vor.u32 %v1316_v33, %v1195_v32 }
 0x351   :  { %v490_v5 = vsel %vm486_vm5, %v476_v60, 256.0  ;;  %v491_v6 = vsel %vm487_vm6, %v477_v61, 256.0  ;;  %v1244_v43 = vor.u32 %v1328_v39, %v1243_v38  ;;  %v1200_v38 = vor.u32 %v1315_v35, %v1197_v36 }
 0x352   :  { %v495_v7 = vmin.f32 %v490_v5, %v491_v6  ;;  %912 = vmatpush.bf16.msra.mxu1 %v1256_v40  ;;  %v1354_v40 = vld [vmem:[%s1670_s11] ss:$0 sm:$0xff]  ;;  %s1504_s11 = smov [#allocation11]  }
 0x353   :  { %899 = vmatpush.bf16.msra.mxu2 %v1244_v43  ;;  %s934_s10 = sshll.u32 %s1504_s11, 4  ;;  %s935_s10 = int_to_ptr.vmem [resolvable:$true] %s934_s10 }
 0x354   :  { %496 = vmin.xlane.f32.xlu1 %v495_v7 }
 0x356   :  { %913 = vmatpush.bf16.msra.mxu1 %v1248_v44 }
 0x357   :  { %900 = vmatpush.bf16.msra.mxu2 %v1236_v56 }
 0x35a   :  { %914 = vmatpush.bf16.msra.mxu1 %v1240_v58 }
 0x35e   :  { %915 = vmatpush.bf16.msra.mxu1 %v1232_v19 }
 0x362   :  { %v700_v3 = vpop.permute.xlu0 %699 }
 0x363   :  { %vm704_vm2 = vcmp.eq.s32.totalorder %v700_v3, 1 }
 0x36d   :  { %702 = vperm.xlu1 %1351, %v697_v17   ;;  %v1228_v17 = vor.u32 %v1324_v15, %v1227_v14 }
 0x36f   :  { %901 = vmatpush.bf16.msra.mxu2 %v1228_v17 }
 0x3bf   :  { %v494_v21 = vpop.xlane.xlu1 %493 }
 0x3c0   :  { %vm498_vm11 = vcmp.eq.f32.partialorder %v476_v60, %v494_v21  ;;  %vm499_vm14 = vcmp.eq.f32.partialorder %v477_v61, %v494_v21  ;;  %v1321_v21 = vld [vmem:[#allocation9 + $0x34] sm:$0xf] }
 0x3c7   :  { %v497_v22 = vpop.xlane.xlu1 %496 }
 0x3c8   :  { %vm500_vm12 = vcmp.eq.f32.partialorder %v476_v60, %v497_v22  ;;  %vm501_vm13 = vcmp.eq.f32.partialorder %v477_v61, %v497_v22  ;;  %v683_v60 = vpop.permute.xlu2 %682  ;;  %v678_v61 = vunpack.c.l.bf16 %v677_v59 }
 0x3c9   :  { %vm1157_vm15 = vmpackc.low %vm500_vm12, %vm498_vm11  ;;  %vm687_vm1 = vcmp.eq.s32.totalorder %v683_v60, 1 }
 0x3ca   :  { %vm1159_vm0 = vmpackc.low %vm501_vm13, %vm499_vm14  ;;  %1158 = vmatmul.msk.bf16.vlgmr.msrb.gmra.mxu1 %vm1157_vm15, %v1502_v23  ;;  %v689_v1 = vperm.slane %v678_v61, 0 }
 0x3cb   :  { %1160 = vmatmul.msk.bf16.vlgmr.msrb.gmra.mxu3 %vm1159_vm0, %v1502_v23  ;;  %v1319_v23 = vld [vmem:[#allocation9 + $0x24] sm:$0xf] }
 0x3cc   :  { %v1216_v26 = vor.u32 %v1319_v23, %v1213_v25 }
 0x3d0   :  { %v686_v6 = vpop.permute.xlu2 %685 }
 0x3d1   :  { %vm688_vm4 = vcmp.eq.s32.totalorder %v686_v6, 1 }
 0x3df   :  { %v703_v4 = vpop.permute.xlu1 %702 }
 0x3e0   :  { %vm705_vm3 = vcmp.eq.s32.totalorder %v703_v4, 1 }
 0x447   :  { %v649_v52 = vpop.f32.mrf.mxu1 }
 0x44e   :  { %v663_v55 = vpop.f32.mrf.mxu3 }
 0x44f   :  { %v664_v57 = vadd.f32 %v663_v55, %v649_v52  ;;  %v651_v62 = vpop.f32.mrf.mxu1  ;;  %v743_v52 = vld [vmem:[%s1672_s13] sm:$0x3]  ;;  %s1505_s13 = smov 256  }
 0x450   :  { %v815_v53 = vperm.slane %v743_v52, 1  ;;  %v814_v56 = vperm.slane %v743_v52, 0 }
 0x451   :  { %669 = vst [vmem:[#allocation2 + $0x8] sm:$0xff] %v664_v57 }
 0x456   :  { %v665_v63 = vpop.f32.mrf.mxu3 }
 0x457   :  { %v666_v0 = vadd.f32 %v665_v63, %v651_v62 }
 0x458   :  { %v671_v2 = vld [vmem:[#allocation2 + $0x7] sm:$0xff] }
 0x459   :  { %670 = vst [vmem:[#allocation2 + $0x10] sm:$0xff] %v666_v0  ;;  %v690_v5 = vsel %vm687_vm1, %v689_v1, %v671_v2 }
 0x45a   :  { %v706_v8 = vsel %vm704_vm2, %v1333_v49, %v690_v5  ;;  %v1322_v49 = vld [vmem:[#allocation9 + $0x34] sm:$0xf0] }
 0x45b   :  { %v708_v11 = vadd.f32 %v706_v8, %v1606_v47  ;;  %v1220_v22 = vor.u32 %v1322_v49, %v1219_v20  ;;  %v1211_v47 = vld [vmem:[#allocation9 + $0x20] sm:$0xf] }
 0x45d   :  { %902 = vmatpush.bf16.msra.mxu2 %v1220_v22 }
 0x460   :  { %v672_v7 = vld [vmem:[#allocation2 + $0xf] sm:$0xff] }
 0x461   :  { %v691_v9 = vsel %vm688_vm4, %v689_v1, %v672_v7 }
 0x462   :  { %v707_v10 = vsel %vm705_vm3, %v1334_v50, %v691_v9  ;;  %v1224_v50 = vor.u32 %v1321_v21, %v1221_v48 }
 0x463   :  { %v709_v12 = vadd.f32 %v707_v10, %v1615_v51  ;;  %v1320_v51 = vld [vmem:[#allocation9 + $0x24] sm:$0xf0] }
 0x464   :  { %916 = vmatpush.bf16.msra.mxu1 %v1224_v50  ;;  %v1212_v24 = vor.u32 %v1320_v51, %v1211_v47 }
 0x465   :  { %v744_v13 = vpack.c.bf16 %v709_v12, %v708_v11 }
 0x466   :  { %903 = vmatpush.bf16.msra.mxu2 %v1212_v24 }
 0x467   :  { %804 = vmatmul.bf16.vlgmr.msra.gmra.mxu0 %v744_v13 }
 0x468   :  { %917 = vmatpush.bf16.msra.mxu1 %v1216_v26 }
 0x46a   :  { %904 = vmatpush.bf16.msra.mxu2 %v1204_v30 }
 0x46c   :  { %918 = vmatpush.bf16.msra.mxu1 %v1208_v34 }
 0x46e   :  { %905 = vmatpush.bf16.msra.mxu2 %v1196_v37 }
 0x470   :  { %919 = vmatpush.bf16.msra.mxu1 %v1200_v38 }
 0x4e4   :  { %v805_v39 = vpop.f32.mrf.mxu0 }
 0x4e5   :  { %v806_v41 = vadd.f32 %v1354_v40, %v805_v39 }
 0x4e7   :  { %1361 = vtanh.f32 %v806_v41 }
 0x4ec   :  { %v807_v42 = vpop.f32.mrf.mxu0 }
 0x4ed   :  { %v808_v43 = vadd.f32 %v1354_v40, %v807_v42  ;;  %v1362_v44 = vpop.eup %1361 }
 0x4ef   :  { %1363 = vtanh.f32 %v808_v43 }
 0x4f5   :  { %v1364_v45 = vpop.eup %1363 }
 0x4f6   :  { %v812_v46 = vpack.c.bf16 %v1364_v45, %v1362_v44 }
 0x4f8   :  { %906 = vmatmul.bf16.vlgmr.msra.gmra.mxu2 %v812_v46  ;;  %920 = vmatmul.bf16.vlgmr.msra.gmra.mxu1 %v812_v46 }
 0x575   :  { %v921_v54 = vpop.f32.mrf.mxu1 }
 0x576   :  { %v922_v55 = vadd.f32 %v921_v54, %v815_v53 }
 0x578   :  { %927 = vst [vmem:[#allocation11 + $0x8] sm:$0xff] %v922_v55 }
 0x57b   :  { %v907_v57 = vpop.f32.mrf.mxu2 }
 0x57c   :  { %v908_v58 = vadd.f32 %v907_v57, %v814_v56 }
 0x57d   :  { %v923_v59 = vpop.f32.mrf.mxu1 }
 0x57e   :  { %926 = vst [vmem:[#allocation11] sm:$0xff] %v908_v58  ;;  %v924_v60 = vadd.f32 %v923_v59, %v815_v53 }
 0x580   :  { %929 = vst [vmem:[#allocation11 + $0x18] sm:$0xff] %v924_v60 }
 0x583   :  { %v909_v61 = vpop.f32.mrf.mxu2 }
 0x584   :  { %v910_v62 = vadd.f32 %v909_v61, %v814_v56 }
 0x586   :  { %928 = vst [vmem:[#allocation11 + $0x10] sm:$0xff] %v910_v62 }
 0x587   :  { %942 = dma.vmem_to_hbm [thread:$0]  %s935_s10, 512, %s937_s20, [#allocation5], %s1505_s13, %s1505_s13, %s1506_s0  }
 0x588   :  { %1491 = dma.done.wait [#allocation5], 512  }
 0x589   :  { %1492 = vsyncadd [#allocation5], 4294966784 }
 0x58a   :  { %947 = vsyncpa [#allocation4], 1 }
 0x58b   :  { %948 = vsyncpa [#allocation7], 1 }
 0x58c   :  { %949 = vsyncpa [#allocation10], 1 }
 0x58d   :  { %950 = vsyncpa [#allocation5], 1 }

</bundles_post_ra>
